<compile_context>
chip_gen: v6e
topology: v6e:2x2x1
jax: 0.10.0
libtpu: 0.0.40
codegen_flags: <defaults>
</compile_context>

<pallas_src>
import jax
import jax.numpy as jnp
from jax import lax
from jax.experimental import pallas as pl
from jax.experimental.pallas import tpu as pltpu

_SUBLANE = 8
_MAX_TILE_ROWS = 8192


def _cdiv(a, b):
    return -(-a // b)


def _round_up(x, m):
    return ((x + m - 1) // m) * m


def _device_config():
    """Generation-specific knobs (safe single-TC defaults if kind is unknown)."""
    try:
        kind = jax.devices()[0].device_kind.lower()
    except Exception:
        kind = ""
    multi_tc = ("v7" in kind) or ("7x" in kind)
    if multi_tc:
        # v7x: 2 TensorCores, 64 MiB VMEM each.  Keep per-step distinct output
        # blocks + "parallel" so the grid shards across cores; double-buffered
        # inputs stay ~2 x 16 MiB inside the 48 MiB scoped limit.
        return dict(accumulate=False,
                    pair_budget=16 * 1024 * 1024,
                    vmem_limit=48 * 1024 * 1024)
    # v5e / v6e: single TensorCore, 128 MiB VMEM.  "parallel" is a measured
    # no-op there, so use a resident (8, D) accumulator ("arbitrary") which
    # removes per-step output writeback and shrinks the JAX epilogue; spend the
    # spare VMEM on bigger tiles.
    return dict(accumulate=True,
                pair_budget=24 * 1024 * 1024,
                vmem_limit=80 * 1024 * 1024)


def _max_tile_rows(n_rows, feat, itemsize, budget_bytes):
    """Largest aligned row tile whose (a, b) pair, double buffered, fits budget."""
    align = max(_SUBLANE, 32 // max(itemsize, 1))   # 8 for f32, 16 for bf16, ...
    per_row_bytes = 2 * 2 * feat * itemsize         # 2 tensors x 2 pipeline buffers
    tr = int(budget_bytes // max(per_row_bytes, 1))
    tr = (tr // align) * align
    tr = max(align, min(tr, _MAX_TILE_ROWS))
    tr = min(tr, _round_up(max(n_rows, 1), align))  # never larger than needed
    return tr, align


def _balanced_tile_rows(n_rows, grid, align, max_tr):
    """Aligned tile rows so this pair needs <= `grid` blocks (== in common case)."""
    tr = min(max_tr, _round_up(_cdiv(max(n_rows, 1), grid), align))
    return max(align, tr)


def _in_map(n_blocks, grid):
    """Input index_map; clamps only if this pair has fewer blocks than the grid."""
    if n_blocks >= grid:
        return lambda t: (t, 0)
    last = n_blocks - 1
    return lambda t: (jnp.minimum(t, last), 0)


def _make_kernel(n_u, tr_u, nb_u, n_i, tr_i, nb_i, grid, accumulate):
    ragged_u = (n_u % tr_u) != 0
    ragged_i = (n_i % tr_i) != 0
    # Leading grid steps whose tile for this pair consists only of valid rows.
    full_u = nb_u - 1 if ragged_u else nb_u
    full_i = nb_i - 1 if ragged_i else nb_i
    plain_u = (nb_u == grid) and not ragged_u   # never needs the masked path
    plain_i = (nb_i == grid) and not ragged_i

    def kernel(u_ref, ur_ref, i_ref, ir_ref, ou_ref, ov_ref):
        t = pl.program_id(0)

        if accumulate:
            @pl.when(t == 0)
            def _():
                ou_ref[...] = jnp.zeros_like(ou_ref)
                ov_ref[...] = jnp.zeros_like(ov_ref)

        def strip(a_ref, b_ref, tile_rows, n_rows, masked):
            # Subtract in the input dtype, upcast the difference, square in f32.
            d = (a_ref[...] - b_ref[...]).astype(jnp.float32)
            sq = d * d
            if masked:
                # NOTE: int32 row index; fine unless total rows exceed 2**31.
                row = t * tile_rows + lax.broadcasted_iota(jnp.int32, sq.shape, 0)
                sq = jnp.where(row < n_rows, sq, 0.0)
            # Fold (tile_rows, D) -> (8, D) with pure VPU adds along the leading
            # axis (sublane-tile-preserving reshape): no XLU reduce, no scatter.
            feat = sq.shape[-1]
            return jnp.sum(sq.reshape(tile_rows // _SUBLANE, _SUBLANE, feat),
                           axis=0)

        def emit(out_ref, value):
            if accumulate:
                out_ref[...] += value
            else:
                out_ref[...] = value

        def pair(a_ref, b_ref, out_ref, tile_rows, n_rows, full, plain):
            if plain:
                emit(out_ref, strip(a_ref, b_ref, tile_rows, n_rows, False))
                return

            @pl.when(t < full)
            def _():
                emit(out_ref, strip(a_ref, b_ref, tile_rows, n_rows, False))

            @pl.when(t >= full)
            def _():
                # Masked tail: covers the ragged last real block and, for an
                # imbalanced pair whose index_map clamps, any phantom trailing
                # steps (row mask is then all-false -> contributes zero).
                emit(out_ref, strip(a_ref, b_ref, tile_rows, n_rows, True))

        pair(u_ref, ur_ref, ou_ref, tr_u, n_u, full_u, plain_u)
        pair(i_ref, ir_ref, ov_ref, tr_i, n_i, full_i, plain_i)

    return kernel


def reconstruction_loss(ufeats, ifeats, ufeats_r, ifeats_r, *,
                        pair_vmem_budget_bytes=None,
                        vmem_limit_bytes=None,
                        accumulate=None):
    """JAX/Pallas equivalent of ReconstructionLoss.forward."""
    assert ufeats.shape == ufeats_r.shape
    assert ifeats.shape == ifeats_r.shape

    cfg = _device_config()
    if pair_vmem_budget_bytes is None:
        pair_vmem_budget_bytes = cfg["pair_budget"]
    if vmem_limit_bytes is None:
        vmem_limit_bytes = cfg["vmem_limit"]
    if accumulate is None:
        accumulate = cfg["accumulate"]

    # mean() over everything but the last dim == total_sq_sum / prod(shape[:-1])
    u = ufeats.reshape(-1, ufeats.shape[-1])
    ur = ufeats_r.reshape(-1, ufeats_r.shape[-1])
    v = ifeats.reshape(-1, ifeats.shape[-1])
    vr = ifeats_r.reshape(-1, ifeats_r.shape[-1])

    n_u, d_u = u.shape
    n_i, d_i = v.shape

    # Per-pair max tile from the VMEM budget, then balance both pairs on a
    # single grid so per-step DMA bytes are uniform and (normally) no clamped
    # zero-work steps exist.
    max_u, align_u = _max_tile_rows(n_u, d_u, u.dtype.itemsize, pair_vmem_budget_bytes)
    max_i, align_i = _max_tile_rows(n_i, d_i, v.dtype.itemsize, pair_vmem_budget_bytes)
    grid = max(_cdiv(n_u, max_u), _cdiv(n_i, max_i))
    tr_u = _balanced_tile_rows(n_u, grid, align_u, max_u)
    tr_i = _balanced_tile_rows(n_i, grid, align_i, max_i)
    nb_u = _cdiv(n_u, tr_u)
    nb_i = _cdiv(n_i, tr_i)

    kernel = _make_kernel(n_u, tr_u, nb_u, n_i, tr_i, nb_i, grid, accumulate)

    if accumulate:
        out_rows = _SUBLANE
        out_map = lambda t: (0, 0)          # resident accumulator block
        semantics = ("arbitrary",)
    else:
        out_rows = grid * _SUBLANE
        out_map = lambda t: (t, 0)          # distinct lane-dense block per step
        semantics = ("parallel",)

    out_u, out_v = pl.pallas_call(
        kernel,
        out_shape=(
            jax.ShapeDtypeStruct((out_rows, d_u), jnp.float32),
            jax.ShapeDtypeStruct((out_rows, d_i), jnp.float32),
        ),
        grid_spec=pltpu.PrefetchScalarGridSpec(
            num_scalar_prefetch=0,
            grid=(grid,),
            in_specs=[
                pl.BlockSpec((tr_u, d_u), _in_map(nb_u, grid)),
                pl.BlockSpec((tr_u, d_u), _in_map(nb_u, grid)),
                pl.BlockSpec((tr_i, d_i), _in_map(nb_i, grid)),
                pl.BlockSpec((tr_i, d_i), _in_map(nb_i, grid)),
            ],
            out_specs=[
                pl.BlockSpec((_SUBLANE, d_u), out_map),
                pl.BlockSpec((_SUBLANE, d_i), out_map),
            ],
        ),
        compiler_params=pltpu.CompilerParams(
            dimension_semantics=semantics,
            vmem_limit_bytes=vmem_limit_bytes,
        ),
    )(u, ur, v, vr)

    # Tiny final reduction + the sum(-1).mean() normalization in plain JAX.
    loss_u = jnp.sum(out_u) / jnp.float32(n_u)
    loss_v = jnp.sum(out_v) / jnp.float32(n_i)
    return (loss_u + loss_v) * jnp.float32(0.5)


def _reference(ufeats, ifeats, ufeats_r, ifeats_r):
    loss_u = jnp.square(ufeats - ufeats_r).sum(axis=-1).mean()
    loss_v = jnp.square(ifeats - ifeats_r).sum(axis=-1).mean()
    return (loss_u + loss_v) / 2.0


if __name__ == "__main__":
    key = jax.random.PRNGKey(0)
    ks = jax.random.split(key, 8)

    # Case 1: small aligned shapes (one pair 2-D, one pair 3-D), auto config.
    ufeats = jax.random.normal(ks[0], (64, 128), dtype=jnp.float32)
    ufeats_r = jax.random.normal(ks[1], (64, 128), dtype=jnp.float32)
    ifeats = jax.random.normal(ks[2], (4, 16, 128), dtype=jnp.float32)
    ifeats_r = jax.random.normal(ks[3], (4, 16, 128), dtype=jnp.float32)

    loss = jax.block_until_ready(
        reconstruction_loss(ufeats, ifeats, ufeats_r, ifeats_r))
    ref = _reference(ufeats, ifeats, ufeats_r, ifeats_r)
    assert jnp.allclose(loss, ref, rtol=1e-4, atol=1e-5), (loss, ref)

    # Case 2: ragged / unequal shapes, non-128 feature dims, deliberately tiny
    # VMEM budget -> multi-step grid exercising the balanced-ragged path for one
    # pair and the clamped-imbalance fallback for the other.  Run BOTH output
    # variants (resident accumulator and per-step blocks).
    u2 = jax.random.normal(ks[4], (52, 96), dtype=jnp.float32)
    u2r = jax.random.normal(ks[5], (52, 96), dtype=jnp.float32)
    i2 = jax.random.normal(ks[6], (37, 160), dtype=jnp.float32)
    i2r = jax.random.normal(ks[7], (37, 160), dtype=jnp.float32)
    ref2 = _reference(u2, i2, u2r, i2r)

    for acc in (True, False):
        loss2 = jax.block_until_ready(
            reconstruction_loss(u2, i2, u2r, i2r,
                                pair_vmem_budget_bytes=24 * 1024,
                                accumulate=acc))
        assert jnp.allclose(loss2, ref2, rtol=1e-4, atol=1e-5), (acc, loss2, ref2)

    print("KERNEL_OK")
</pallas_src>

<mosaic_0001>
module attributes {stable_mosaic.version = 11 : i64} {
  func.func @kernel(%arg0: i32, %arg1: memref<64x128xf32, #tpu.memory_space<vmem>>, %arg2: memref<64x128xf32, #tpu.memory_space<vmem>>, %arg3: memref<64x128xf32, #tpu.memory_space<vmem>>, %arg4: memref<64x128xf32, #tpu.memory_space<vmem>>, %arg5: memref<8x128xf32, #tpu.memory_space<vmem>>, %arg6: memref<8x128xf32, #tpu.memory_space<vmem>>) attributes {dimension_semantics = [#tpu.dimension_semantics<arbitrary>], iteration_bounds = array<i64: 1>, scalar_prefetch = 0 : i64, scratch_operands = 0 : i64, tpu.core_type = #tpu.core_type<tc>, window_params = [{transform_indices = @transform_0, window_bounds = array<i64: 64, 128>}, {transform_indices = @transform_1, window_bounds = array<i64: 64, 128>}, {transform_indices = @transform_2, window_bounds = array<i64: 64, 128>}, {transform_indices = @transform_3, window_bounds = array<i64: 64, 128>}, {pipeline_mode = #tpu.pipeline_mode<synchronous>, transform_indices = @transform_4, window_bounds = array<i64: 8, 128>}, {pipeline_mode = #tpu.pipeline_mode<synchronous>, transform_indices = @transform_5, window_bounds = array<i64: 8, 128>}]} {
    %c0_i32 = arith.constant 0 : i32
    %0 = arith.cmpi eq, %arg0, %c0_i32 : i32
    %1 = arith.extui %0 : i1 to i32
    %c0_i32_0 = arith.constant 0 : i32
    %2 = arith.cmpi ne, %1, %c0_i32_0 : i32
    scf.if %2 {
      %cst_17 = arith.constant 0.000000e+00 : f32
      %21 = vector.broadcast %cst_17 : f32 to vector<8x128xf32>
      %c0_18 = arith.constant 0 : index
      %c0_19 = arith.constant 0 : index
      %22 = vector.load %arg5[%c0_18, %c0_19] : memref<8x128xf32, #tpu.memory_space<vmem>>, vector<8x128xf32>
      tpu.vector_store %arg5[%c0_18, %c0_19], %21 {strides = array<i32>} : memref<8x128xf32, #tpu.memory_space<vmem>>, vector<8x128xf32>,
      %cst_20 = arith.constant 0.000000e+00 : f32
      %23 = vector.broadcast %cst_20 : f32 to vector<8x128xf32>
      %c0_21 = arith.constant 0 : index
      %c0_22 = arith.constant 0 : index
      %24 = vector.load %arg6[%c0_21, %c0_22] : memref<8x128xf32, #tpu.memory_space<vmem>>, vector<8x128xf32>
      tpu.vector_store %arg6[%c0_21, %c0_22], %23 {strides = array<i32>} : memref<8x128xf32, #tpu.memory_space<vmem>>, vector<8x128xf32>,
    } else {
    }
    %c0 = arith.constant 0 : index
    %c0_1 = arith.constant 0 : index
    %3 = vector.load %arg1[%c0, %c0_1] : memref<64x128xf32, #tpu.memory_space<vmem>>, vector<64x128xf32>
    %c0_2 = arith.constant 0 : index
    %c0_3 = arith.constant 0 : index
    %4 = vector.load %arg2[%c0_2, %c0_3] : memref<64x128xf32, #tpu.memory_space<vmem>>, vector<64x128xf32>
    %5 = arith.subf %3, %4 : vector<64x128xf32>
    %6 = arith.mulf %5, %5 : vector<64x128xf32>
    %7 = vector.shape_cast %6 : vector<64x128xf32> to vector<8x8x128xf32>
    %cst = arith.constant dense<0.000000e+00> : vector<8x128xf32>
    %8 = vector.multi_reduction <add>, %7, %cst [0] : vector<8x8x128xf32> to vector<8x128xf32>
    %c0_4 = arith.constant 0 : index
    %c0_5 = arith.constant 0 : index
    %9 = vector.load %arg5[%c0_4, %c0_5] : memref<8x128xf32, #tpu.memory_space<vmem>>, vector<8x128xf32>
    %10 = arith.addf %9, %8 : vector<8x128xf32>
    %c0_6 = arith.constant 0 : index
    %c0_7 = arith.constant 0 : index
    %11 = vector.load %arg5[%c0_6, %c0_7] : memref<8x128xf32, #tpu.memory_space<vmem>>, vector<8x128xf32>
    tpu.vector_store %arg5[%c0_6, %c0_7], %10 {strides = array<i32>} : memref<8x128xf32, #tpu.memory_space<vmem>>, vector<8x128xf32>,
    %c0_8 = arith.constant 0 : index
    %c0_9 = arith.constant 0 : index
    %12 = vector.load %arg3[%c0_8, %c0_9] : memref<64x128xf32, #tpu.memory_space<vmem>>, vector<64x128xf32>
    %c0_10 = arith.constant 0 : index
    %c0_11 = arith.constant 0 : index
    %13 = vector.load %arg4[%c0_10, %c0_11] : memref<64x128xf32, #tpu.memory_space<vmem>>, vector<64x128xf32>
    %14 = arith.subf %12, %13 : vector<64x128xf32>
    %15 = arith.mulf %14, %14 : vector<64x128xf32>
    %16 = vector.shape_cast %15 : vector<64x128xf32> to vector<8x8x128xf32>
    %cst_12 = arith.constant dense<0.000000e+00> : vector<8x128xf32>
    %17 = vector.multi_reduction <add>, %16, %cst_12 [0] : vector<8x8x128xf32> to vector<8x128xf32>
    %c0_13 = arith.constant 0 : index
    %c0_14 = arith.constant 0 : index
    %18 = vector.load %arg6[%c0_13, %c0_14] : memref<8x128xf32, #tpu.memory_space<vmem>>, vector<8x128xf32>
    %19 = arith.addf %18, %17 : vector<8x128xf32>
    %c0_15 = arith.constant 0 : index
    %c0_16 = arith.constant 0 : index
    %20 = vector.load %arg6[%c0_15, %c0_16] : memref<8x128xf32, #tpu.memory_space<vmem>>, vector<8x128xf32>
    tpu.vector_store %arg6[%c0_15, %c0_16], %19 {strides = array<i32>} : memref<8x128xf32, #tpu.memory_space<vmem>>, vector<8x128xf32>,
    return
  }
  func.func @transform_0(%arg0: i32) -> (i32, i32) {
    %c0_i32 = arith.constant 0 : i32
    %c0_i32_0 = arith.constant 0 : i32
    return %arg0, %c0_i32 : i32, i32
  }
  func.func @transform_1(%arg0: i32) -> (i32, i32) {
    %c0_i32 = arith.constant 0 : i32
    %c0_i32_0 = arith.constant 0 : i32
    return %arg0, %c0_i32 : i32, i32
  }
  func.func @transform_2(%arg0: i32) -> (i32, i32) {
    %c0_i32 = arith.constant 0 : i32
    %c0_i32_0 = arith.constant 0 : i32
    return %arg0, %c0_i32 : i32, i32
  }
  func.func @transform_3(%arg0: i32) -> (i32, i32) {
    %c0_i32 = arith.constant 0 : i32
    %c0_i32_0 = arith.constant 0 : i32
    return %arg0, %c0_i32 : i32, i32
  }
  func.func @transform_4(%arg0: i32) -> (i32, i32) {
    %c0_i32 = arith.constant 0 : i32
    %c0_i32_0 = arith.constant 0 : i32
    %c0_i32_1 = arith.constant 0 : i32
    return %c0_i32, %c0_i32_0 : i32, i32
  }
  func.func @transform_5(%arg0: i32) -> (i32, i32) {
    %c0_i32 = arith.constant 0 : i32
    %c0_i32_0 = arith.constant 0 : i32
    %c0_i32_1 = arith.constant 0 : i32
    return %c0_i32, %c0_i32_0 : i32, i32
  }
}

</mosaic_0001>

<bundles_post_ra>
// kernel: tpu_custom_call.1
= control target key start
LH: loop header
LB: loop body
LE: loop exit
PB: predicated region body
PF: predicated region fallthrough
CT: control target
= control target key end

     0   :  { %11 = vsyncpa [#allocation3], 0  ;;  %s404_s0 = inlined_call_operand.hbm [shape: f32[64,128], index: 0, kind: input, shape index: {}]   ;;  %s405_s1 = inlined_call_operand.hbm [shape: f32[64,128], index: 1, kind: input, shape index: {}]   ;;  %s406_s2 = inlined_call_operand.hbm [shape: f32[64,128], index: 2, kind: input, shape index: {}]   ;;  %s407_s3 = inlined_call_operand.hbm [shape: f32[64,128], index: 3, kind: input, shape index: {}]   ;;  %s408_s4 = inlined_call_operand.hbm [shape: f32[8,128], index: 4, kind: output, shape index: {0}]   ;;  %s409_s5 = inlined_call_operand.hbm [shape: f32[8,128], index: 5, kind: output, shape index: {1}]  }
   0x1   :  { %12 = vsyncpa [#allocation6], 0 }
   0x2   :  { %13 = vsyncpa [#allocation9], 0 }
   0x3   :  { %14 = vsyncpa [#allocation4], 0 }
   0x4   :  { %15 = vsyncpa [#allocation12], 0  ;;  %s336_s18 = smov [#allocation5]   ;;  %s337_s20 = smov [#allocation2]  }
   0x5   :  { %s33_s19 = sshll.u32 %s336_s18, 4  ;;  %s21_s21 = sshll.u32 %s337_s20, 4  ;;  %s34_s19 = int_to_ptr.vmem [resolvable:$true] %s33_s19  ;;  %s22_s21 = int_to_ptr.vmem [resolvable:$true] %s21_s21 }
   0x6   :  { %s214_s22 = scalar_lea.vmem %s34_s19, 1024  ;;  %p219_p1 = scmp.lt.s32.totalorder %s34_s19, %s34_s19 }
   0x7   :  { %p215_p0 = scmp.ne.s32.totalorder %s34_s19, %s214_s22  ;;  %p220_p2 = scmp.lt.s32.totalorder %s214_s22, %s214_s22 }
   0x9   :  { %p221_p3 = por %p220_p2, %p219_p1 }
   0xb   :  { %p222_p4 = pnand %p221_p3, %p215_p0 }
   0xd   :  { %225 = shalt.err (!%p222_p4)
}
   0xe   :  { %s338_s23 = smov 128   ;;  %s339_s24 = smov 8  }
   0xf   :  { %39 = dma.hbm_to_vmem [thread:$0]  %s405_s1, 1024, %s34_s19, [#allocation6], %s338_s23, %s338_s23, %s339_s24  }
  0x10   :  { %s234_s27 = scalar_lea.vmem %s22_s21, 1024  ;;  %p239_p6 = scmp.lt.s32.totalorder %s22_s21, %s22_s21 }
  0x11   :  { %p235_p5 = scmp.ne.s32.totalorder %s22_s21, %s234_s27  ;;  %p240_p7 = scmp.lt.s32.totalorder %s234_s27, %s234_s27 }
  0x13   :  { %p241_p8 = por %p240_p7, %p239_p6 }
  0x15   :  { %p242_p9 = pnand %p241_p8, %p235_p5 }
  0x17   :  { %245 = shalt.err (!%p242_p9)
}
  0x18   :  { %27 = dma.hbm_to_vmem [thread:$0]  %s404_s0, 1024, %s22_s21, [#allocation3], %s338_s23, %s338_s23, %s339_s24  }
  0x19   :  { %s340_s30 = smov [#allocation7]   ;;  %s341_s7 = smov [#allocation8]  }
  0x1a   :  { %s45_s6 = sshll.u32 %s340_s30, 4  ;;  %s57_s8 = sshll.u32 %s341_s7, 4  ;;  %s46_s6 = int_to_ptr.vmem [resolvable:$true] %s45_s6  ;;  %s58_s8 = int_to_ptr.vmem [resolvable:$true] %s57_s8 }
  0x1b   :  { %s254_s1 = scalar_lea.vmem %s46_s6, 1024  ;;  %p259_p11 = scmp.lt.s32.totalorder %s46_s6, %s46_s6 }
  0x1c   :  { %p255_p10 = scmp.ne.s32.totalorder %s46_s6, %s254_s1  ;;  %p260_p12 = scmp.lt.s32.totalorder %s254_s1, %s254_s1 }
  0x1e   :  { %p261_p13 = por %p260_p12, %p259_p11 }
  0x20   :  { %p262_p0 = pnand %p261_p13, %p255_p10 }
  0x22   :  { %265 = shalt.err (!%p262_p0)
}
  0x23   :  { %51 = dma.hbm_to_vmem [thread:$0]  %s406_s2, 1024, %s46_s6, [#allocation6], %s338_s23, %s338_s23, %s339_s24  }
  0x24   :  { %s274_s0 = scalar_lea.vmem %s58_s8, 1024  ;;  %p279_p2 = scmp.lt.s32.totalorder %s58_s8, %s58_s8 }
  0x25   :  { %p275_p1 = scmp.ne.s32.totalorder %s58_s8, %s274_s0  ;;  %p280_p3 = scmp.lt.s32.totalorder %s274_s0, %s274_s0 }
  0x27   :  { %p281_p4 = por %p280_p3, %p279_p2 }
  0x29   :  { %p282_p5 = pnand %p281_p4, %p275_p1 }
  0x2b   :  { %285 = shalt.err (!%p282_p5)
}
  0x2c   :  { %63 = dma.hbm_to_vmem [thread:$0]  %s407_s3, 1024, %s58_s8, [#allocation9], %s338_s23, %s338_s23, %s339_s24  }
  0x2d   :  { %326 = dma.done.wait [#allocation3], 1024  }
  0x2e   :  { %327 = vsyncadd [#allocation3], 4294966272 }
  0x2f   :  { %328 = dma.done.wait [#allocation6], 2048  }
  0x30   :  { %329 = vsyncadd [#allocation6], 4294965248 }
  0x31   :  { %330 = dma.done.wait [#allocation9], 1024  }
  0x32   :  { %331 = vsyncadd [#allocation9], 4294966272  ;;  %v82_v0 = vld [vmem:[#allocation2] sm:$0xff]  ;;  %v83_v1 = vld [vmem:[#allocation2 + $0x8] sm:$0xff]  ;;  %s342_s2 = smov [#allocation10]   ;;  %s343_s13 = smov [#allocation11]  }
  0x33   :  { %v84_v2 = vld [vmem:[#allocation2 + $0x10] sm:$0xff]  ;;  %v85_v3 = vld [vmem:[#allocation2 + $0x18] sm:$0xff]  ;;  %v86_v4 = vld [vmem:[#allocation2 + $0x20] sm:$0xff]  ;;  %s172_s3 = sshll.u32 %s342_s2, 4  ;;  %s182_s14 = sshll.u32 %s343_s13, 4  ;;  %s173_s3 = int_to_ptr.vmem [resolvable:$true] %s172_s3  ;;  %s183_s14 = int_to_ptr.vmem [resolvable:$true] %s182_s14 }
  0x34   :  { %v90_v5 = vld [vmem:[#allocation5] sm:$0xff]  ;;  %v91_v6 = vld [vmem:[#allocation5 + $0x8] sm:$0xff]  ;;  %v92_v7 = vld [vmem:[#allocation5 + $0x10] sm:$0xff]  ;;  %s286_s15 = scalar_lea.vmem %s173_s3, 128  ;;  %p291_p7 = scmp.lt.s32.totalorder %s173_s3, %s173_s3 }
  0x35   :  { %v93_v8 = vld [vmem:[#allocation5 + $0x18] sm:$0xff]  ;;  %v98_v9 = vsub.f32 %v82_v0, %v90_v5  ;;  %v94_v10 = vld [vmem:[#allocation5 + $0x20] sm:$0xff]  ;;  %v99_v11 = vsub.f32 %v83_v1, %v91_v6  ;;  %v100_v12 = vsub.f32 %v84_v2, %v92_v7  ;;  %v87_v14 = vld [vmem:[#allocation2 + $0x28] sm:$0xff]  ;;  %p287_p6 = scmp.ne.s32.totalorder %s173_s3, %s286_s15  ;;  %p292_p8 = scmp.lt.s32.totalorder %s286_s15, %s286_s15 }
  0x36   :  { %v101_v13 = vsub.f32 %v85_v3, %v93_v8  ;;  %v88_v15 = vld [vmem:[#allocation2 + $0x30] sm:$0xff]  ;;  %v95_v16 = vld [vmem:[#allocation5 + $0x28] sm:$0xff]  ;;  %v102_v18 = vsub.f32 %v86_v4, %v94_v10  ;;  %v124_v21 = vld [vmem:[#allocation7] sm:$0xff] }
  0x37   :  { %v106_v17 = vmul.f32 %v98_v9, %v98_v9  ;;  %v107_v19 = vmul.f32 %v99_v11, %v99_v11  ;;  %v108_v20 = vmul.f32 %v100_v12, %v100_v12  ;;  %v125_v22 = vld [vmem:[#allocation7 + $0x8] sm:$0xff]  ;;  %v126_v23 = vld [vmem:[#allocation7 + $0x10] sm:$0xff]  ;;  %v89_v24 = vld [vmem:[#allocation2 + $0x38] sm:$0xff]  ;;  %v103_v28 = vsub.f32 %v87_v14, %v95_v16  ;;  %p293_p9 = por %p292_p8, %p291_p7 }
  0x38   :  { %v96_v25 = vld [vmem:[#allocation5 + $0x30] sm:$0xff]  ;;  %v127_v26 = vld [vmem:[#allocation7 + $0x18] sm:$0xff]  ;;  %v128_v27 = vld [vmem:[#allocation7 + $0x20] sm:$0xff]  ;;  %v109_v29 = vmul.f32 %v101_v13, %v101_v13  ;;  %v110_v41 = vmul.f32 %v102_v18, %v102_v18 }
  0x39   :  { %v114_v30 = vadd.f32 %v107_v19, %v106_v17  ;;  %v132_v31 = vld [vmem:[#allocation8] sm:$0xff]  ;;  %v133_v32 = vld [vmem:[#allocation8 + $0x8] sm:$0xff]  ;;  %v134_v33 = vld [vmem:[#allocation8 + $0x10] sm:$0xff]  ;;  %v104_v40 = vsub.f32 %v88_v15, %v96_v25  ;;  %v111_v50 = vmul.f32 %v103_v28, %v103_v28  ;;  %p294_p10 = pnand %p293_p9, %p287_p6 }
  0x3a   :  { %v97_v34 = vld [vmem:[#allocation5 + $0x38] sm:$0xff]  ;;  %v136_v36 = vld [vmem:[#allocation8 + $0x20] sm:$0xff]  ;;  %v140_v37 = vsub.f32 %v124_v21, %v132_v31  ;;  %v141_v38 = vsub.f32 %v125_v22, %v133_v32  ;;  %v142_v39 = vsub.f32 %v126_v23, %v134_v33  ;;  %v129_v43 = vld [vmem:[#allocation7 + $0x28] sm:$0xff] }
  0x3b   :  { %v135_v35 = vld [vmem:[#allocation8 + $0x18] sm:$0xff]  ;;  %v115_v42 = vadd.f32 %v114_v30, %v108_v20  ;;  %v137_v44 = vld [vmem:[#allocation8 + $0x28] sm:$0xff]  ;;  %v144_v46 = vsub.f32 %v128_v27, %v136_v36  ;;  %v105_v49 = vsub.f32 %v89_v24, %v97_v34  ;;  %v130_v52 = vld [vmem:[#allocation7 + $0x30] sm:$0xff]  ;;  %v112_v58 = vmul.f32 %v104_v40, %v104_v40 }
  0x3c   :  { %v143_v45 = vsub.f32 %v127_v26, %v135_v35  ;;  %v148_v47 = vmul.f32 %v140_v37, %v140_v37  ;;  %v149_v48 = vmul.f32 %v141_v38, %v141_v38  ;;  %v138_v53 = vld [vmem:[#allocation8 + $0x30] sm:$0xff]  ;;  %v150_v54 = vmul.f32 %v142_v39, %v142_v39  ;;  %v131_v60 = vld [vmem:[#allocation7 + $0x38] sm:$0xff] }
  0x3d   :  { %v116_v51 = vadd.f32 %v115_v42, %v109_v29  ;;  %v145_v55 = vsub.f32 %v129_v43, %v137_v44  ;;  %v139_v61 = vld [vmem:[#allocation8 + $0x38] sm:$0xff]  ;;  %v146_v62 = vsub.f32 %v130_v52, %v138_v53  ;;  %v152_v63 = vmul.f32 %v144_v46, %v144_v46 }
  0x3e   :  { %v151_v56 = vmul.f32 %v143_v45, %v143_v45  ;;  %v156_v57 = vadd.f32 %v149_v48, %v148_v47  ;;  %v113_v1 = vmul.f32 %v105_v49, %v105_v49  ;;  %v147_v3 = vsub.f32 %v131_v60, %v139_v61 }
  0x3f   :  { %v117_v59 = vadd.f32 %v116_v51, %v110_v41  ;;  %v153_v4 = vmul.f32 %v145_v55, %v145_v55  ;;  %v154_v7 = vmul.f32 %v146_v62, %v146_v62 }
  0x40   :  { %v157_v0 = vadd.f32 %v156_v57, %v150_v54  ;;  %v155_v10 = vmul.f32 %v147_v3, %v147_v3 }
  0x41   :  { %v118_v2 = vadd.f32 %v117_v59, %v111_v50 }
  0x42   :  { %v158_v5 = vadd.f32 %v157_v0, %v151_v56 }
  0x43   :  { %v119_v6 = vadd.f32 %v118_v2, %v112_v58 }
  0x44   :  { %v159_v8 = vadd.f32 %v158_v5, %v152_v63 }
  0x45   :  { %v120_v9 = vadd.f32 %v119_v6, %v113_v1 }
  0x46   :  { %v160_v11 = vadd.f32 %v159_v8, %v153_v4 }
  0x47   :  { %123 = vst [vmem:[#allocation10] sm:$0xff] %v120_v9 }
  0x48   :  { %v161_v12 = vadd.f32 %v160_v11, %v154_v7 }
  0x4a   :  { %v162_v13 = vadd.f32 %v161_v12, %v155_v10 }
  0x4b   :  { %297 = shalt.err (!%p294_p10)
}
  0x4c   :  { %175 = dma.vmem_to_hbm [thread:$0]  %s173_s3, 128, %s408_s4, [#allocation4]   ;;  %165 = vst [vmem:[#allocation11] sm:$0xff] %v162_v13 }
  0x4d   :  { %s306_s18 = scalar_lea.vmem %s183_s14, 128  ;;  %p311_p12 = scmp.lt.s32.totalorder %s183_s14, %s183_s14 }
  0x4e   :  { %p307_p11 = scmp.ne.s32.totalorder %s183_s14, %s306_s18  ;;  %p312_p13 = scmp.lt.s32.totalorder %s306_s18, %s306_s18 }
  0x50   :  { %p313_p0 = por %p312_p13, %p311_p12 }
  0x52   :  { %p314_p1 = pnand %p313_p0, %p307_p11 }
  0x54   :  { %317 = shalt.err (!%p314_p1)
}
  0x55   :  { %185 = dma.vmem_to_hbm [thread:$0]  %s183_s14, 128, %s409_s5, [#allocation12]  }
  0x56   :  { %332 = dma.done.wait [#allocation4], 128  }
  0x57   :  { %333 = vsyncadd [#allocation4], 4294967168 }
  0x58   :  { %334 = dma.done.wait [#allocation12], 128  }
  0x59   :  { %335 = vsyncadd [#allocation12], 4294967168 }
  0x5a   :  { %192 = vsyncpa [#allocation3], 1 }
  0x5b   :  { %193 = vsyncpa [#allocation6], 1 }
  0x5c   :  { %194 = vsyncpa [#allocation9], 1 }
  0x5d   :  { %195 = vsyncpa [#allocation4], 1 }
  0x5e   :  { %196 = vsyncpa [#allocation12], 1 }

</bundles_post_ra>
